<compile_context>
chip_gen: v7x
topology: tpu7x:2x2x1
jax: 0.10.0
libtpu: 0.0.40
codegen_flags: <defaults>
</compile_context>

<pallas_src>
import itertools
import numpy as np
import jax
import jax.numpy as jnp
from jax import lax
from jax.experimental import pallas as pl
from jax.experimental.pallas import tpu as pltpu

BN_EPS = 1e-5


def _conv_stats_kernel(p_ref, w_ref, y_ref, ps_ref):
    # p_ref : (1, Kc, TM)   bf16   im2col patches (columns = output positions)
    # w_ref : (1, Cout, Kc) bf16   per-phase sub-kernel matrix
    # y_ref : (1, Cout, TM) f32    conv output tile (lane dim = M -> dense stores)
    # ps_ref: (1, 1, Cout, 2) f32  per-tile per-channel [sum, sum of squares]
    y = jnp.dot(w_ref[0], p_ref[0], preferred_element_type=jnp.float32)  # (Cout, TM)
    y_ref[0] = y
    ssum = jnp.sum(y, axis=1, keepdims=True)        # (Cout, 1)
    ssq = jnp.sum(y * y, axis=1, keepdims=True)     # (Cout, 1)
    ps_ref[0, 0] = jnp.concatenate([ssum, ssq], axis=1)


def _bn_relu_kernel(y_ref, sc_ref, sh_ref, o_ref):
    # y_ref: (1, Cout, TM) f32 ; sc/sh: (Cout, 1) f32 ; o_ref: (1, Cout, TM) f32
    o_ref[0] = jnp.maximum(y_ref[0] * sc_ref[...] + sh_ref[...], 0.0)


def _pick_tm(m, target=2048):
    """Largest M tile that exactly divides m (exact BN counts, no OOB rows) and is a
    multiple of 128 when tiled (lane-aligned)."""
    if m <= target:
        return m
    t = (target // 128) * 128
    while t >= 128:
        if m % t == 0:
            return t
        t -= 128
    # TODO(synk): ragged M tiles (masked rows in the stats pass) for awkward sizes.
    return m


def deconv3d_batchnorm_relu(x, weight, bias, gamma, beta, *, stride, padding):
    """Training-mode forward of deconv3DBatchNormRelu.

    x:      (N, Cin, D, H, W)     float32 (PyTorch NCDHW)
    weight: (Cin, Cout, K, K, K)  float32 (PyTorch ConvTranspose3d layout)
    bias, gamma, beta: (Cout,)    float32
    """
    del bias  # per-channel constant: cancels exactly under training-mode BatchNorm

    N, Cin, D, H, W = x.shape
    Cin_w, Cout, K, K2, K3 = weight.shape
    assert Cin == Cin_w and K == K2 == K3
    s, p = int(stride), int(padding)
    pp = K - 1 - p
    # TODO(synk): support padding > k_size - 1 (needs output cropping); not needed here.
    assert pp >= 0

    Do = (D - 1) * s - 2 * p + K
    Ho = (H - 1) * s - 2 * p + K
    Wo = (W - 1) * s - 2 * p + K
    # TODO(synk): phases with unequal output counts (Do % s != 0) need ragged handling.
    assert Do % s == 0 and Ho % s == 0 and Wo % s == 0
    Qd, Qh, Qw = Do // s, Ho // s, Wo // s

    T = -(-K // s)                     # taps per output phase per dimension
    Kc = T * T * T * Cin               # matmul contraction size (no structural zeros)
    nph = s * s * s                    # number of sub-pixel phases
    Mp = N * Qd * Qh * Qw              # output positions per phase

    # Per-phase first kernel tap and base input offset (same rule for D/H/W).
    kd0 = [(pp - r) % s for r in range(s)]
    base = [(r + kd0[r] - pp) // s for r in range(s)]

    def _pads(dim, q):
        lo = max(0, -min(base))
        hi = max(0, max(base) + (q - 1) + (T - 1) - (dim - 1))
        return lo, hi

    lo_d, hi_d = _pads(D, Qd)
    lo_h, hi_h = _pads(H, Qh)
    lo_w, hi_w = _pads(W, Qw)

    # Channels-last, bf16 (halves DMA bytes for the dominant operand; f32 accumulate).
    x_cl = jnp.transpose(x, (0, 2, 3, 4, 1)).astype(jnp.bfloat16)
    x_pad = jnp.pad(x_cl, ((0, 0), (lo_d, hi_d), (lo_h, hi_h), (lo_w, hi_w), (0, 0)))

    # Per-phase transposed im2col LHS  P_T: (s^3, Kc, Mp)  and weights  W_T: (s^3, Cout, Kc).
    taps = list(itertools.product(range(T), repeat=3))
    phases = list(itertools.product(range(s), repeat=3))
    p_list, w_list = [], []
    for (rd, rh, rw) in phases:
        ad = lo_d + base[rd]
        ah = lo_h + base[rh]
        aw = lo_w + base[rw]
        tap_slices, tap_weights = [], []
        for (td, th, tw) in taps:
            tap_slices.append(
                x_pad[:, ad + td:ad + td + Qd,
                      ah + th:ah + th + Qh,
                      aw + tw:aw + tw + Qw, :])                      # (N,Qd,Qh,Qw,Cin)
            kd = kd0[rd] + td * s
            kh = kd0[rh] + th * s
            kw = kd0[rw] + tw * s
            if kd < K and kh < K and kw < K:
                tap_weights.append(weight[:, :, K - 1 - kd, K - 1 - kh, K - 1 - kw])
            else:
                tap_weights.append(jnp.zeros((Cin, Cout), weight.dtype))
        ph = jnp.stack(tap_slices, axis=0)                  # (T^3, N, Qd, Qh, Qw, Cin)
        ph = jnp.transpose(ph, (0, 5, 1, 2, 3, 4))          # (T^3, Cin, N, Qd, Qh, Qw)
        p_list.append(ph.reshape(Kc, Mp))
        wm = jnp.stack(tap_weights, axis=0).reshape(Kc, Cout)   # rows = (tap, ci)
        w_list.append(wm.T)                                      # (Cout, Kc)
    # TODO(synk): for large inputs, build these patch tiles inside the kernel
    # (index_map over taps / manual DMA from x_pad) instead of materializing P_T in HBM.
    p_t = jnp.stack(p_list, axis=0)                          # (s^3, Kc, Mp) bf16
    w_t = jnp.stack(w_list, axis=0).astype(jnp.bfloat16)     # (s^3, Cout, Kc) bf16

    TM = _pick_tm(Mp)
    nm = Mp // TM
    cparams = pltpu.CompilerParams(
        dimension_semantics=("parallel", "parallel"),   # megacore-shardable on v7x
        vmem_limit_bytes=48 * 1024 * 1024)              # fits v7x's 64 MiB VMEM

    # ---- Pass 1: per-phase MXU matmul + per-tile BN partial statistics -----------
    y_t, pstats = pl.pallas_call(
        _conv_stats_kernel,
        grid=(nph, nm),
        in_specs=[
            pl.BlockSpec((1, Kc, TM), lambda ph, m: (ph, 0, m)),
            pl.BlockSpec((1, Cout, Kc), lambda ph, m: (ph, 0, 0)),
        ],
        out_specs=(
            pl.BlockSpec((1, Cout, TM), lambda ph, m: (ph, 0, m)),
            pl.BlockSpec((1, 1, Cout, 2), lambda ph, m: (ph, m, 0, 0)),
        ),
        out_shape=(
            jax.ShapeDtypeStruct((nph, Cout, Mp), jnp.float32),
            jax.ShapeDtypeStruct((nph, nm, Cout, 2), jnp.float32),
        ),
        compiler_params=cparams,
    )(p_t, w_t)

    # ---- Tiny per-channel glue: fold partial stats into BN scale / shift ---------
    tot = jnp.sum(pstats, axis=(0, 1))                       # (Cout, 2)
    cnt = jnp.float32(nph * Mp)                              # = N * Do * Ho * Wo
    mean = tot[:, 0] / cnt
    var = jnp.maximum(tot[:, 1] / cnt - mean * mean, 0.0)    # biased, as PyTorch BN
    scale = gamma.astype(jnp.float32) * lax.rsqrt(var + BN_EPS)
    shift = beta.astype(jnp.float32) - mean * scale
    scale = scale.reshape(Cout, 1)
    shift = shift.reshape(Cout, 1)

    # ---- Pass 2: fused normalize + affine + ReLU (lane-dense stores) -------------
    o_t = pl.pallas_call(
        _bn_relu_kernel,
        grid=(nph, nm),
        in_specs=[
            pl.BlockSpec((1, Cout, TM), lambda ph, m: (ph, 0, m)),
            pl.BlockSpec((Cout, 1), lambda ph, m: (0, 0)),
            pl.BlockSpec((Cout, 1), lambda ph, m: (0, 0)),
        ],
        out_specs=pl.BlockSpec((1, Cout, TM), lambda ph, m: (ph, 0, m)),
        out_shape=jax.ShapeDtypeStruct((nph, Cout, Mp), jnp.float32),
        compiler_params=cparams,
    )(y_t, scale, shift)

    # ---- Re-interleave the s^3 sub-pixel phases back to NCDHW --------------------
    out = o_t.reshape(s, s, s, Cout, N, Qd, Qh, Qw)
    out = jnp.transpose(out, (4, 3, 5, 0, 6, 1, 7, 2))       # (N,Cout,Qd,s,Qh,s,Qw,s)
    return out.reshape(N, Cout, Do, Ho, Wo)


if __name__ == "__main__":
    # Module config: deconv3DBatchNormRelu(in_channels=4, n_filters=8, k_size=4,
    #                                      stride=2, padding=1, bias=True)
    N, Cin, D, H, W = 2, 4, 4, 4, 4
    Cout, K, stride, padding = 8, 4, 2, 1

    key = jax.random.PRNGKey(0)
    kx, kw, kb, kg, kbeta = jax.random.split(key, 5)
    x = jax.random.normal(kx, (N, Cin, D, H, W), jnp.float32)
    weight = 0.1 * jax.random.normal(kw, (Cin, Cout, K, K, K), jnp.float32)
    bias = 0.1 * jax.random.normal(kb, (Cout,), jnp.float32)
    gamma = 1.0 + 0.1 * jax.random.normal(kg, (Cout,), jnp.float32)
    beta = 0.1 * jax.random.normal(kbeta, (Cout,), jnp.float32)

    out = deconv3d_batchnorm_relu(x, weight, bias, gamma, beta,
                                  stride=stride, padding=padding)
    out = jax.block_until_ready(out)
    Do = (D - 1) * stride - 2 * padding + K
    assert out.shape == (N, Cout, Do, Do, Do), out.shape

    # ---- float64 numpy reference (direct scatter transposed conv + BN + ReLU) ----
    xn = np.asarray(x, np.float64)
    wn = np.asarray(weight, np.float64)
    ref = np.zeros((N, Cout, Do, Do, Do), np.float64)
    for n in range(N):
        for ci in range(Cin):
            for di in range(D):
                for hi in range(H):
                    for wi in range(W):
                        v = xn[n, ci, di, hi, wi]
                        for kd in range(K):
                            od = di * stride - padding + kd
                            if od < 0 or od >= Do:
                                continue
                            for kh in range(K):
                                oh = hi * stride - padding + kh
                                if oh < 0 or oh >= Do:
                                    continue
                                for kw_ in range(K):
                                    ow = wi * stride - padding + kw_
                                    if ow < 0 or ow >= Do:
                                        continue
                                    ref[n, :, od, oh, ow] += v * wn[ci, :, kd, kh, kw_]
    ref += np.asarray(bias, np.float64)[None, :, None, None, None]
    mean = ref.mean(axis=(0, 2, 3, 4), keepdims=True)
    var = ref.var(axis=(0, 2, 3, 4), keepdims=True)  # biased, as PyTorch BN normalization
    ref = (ref - mean) / np.sqrt(var + BN_EPS)
    ref = ref * np.asarray(gamma, np.float64)[None, :, None, None, None] \
          + np.asarray(beta, np.float64)[None, :, None, None, None]
    ref = np.maximum(ref, 0.0)

    # Tolerance reflects bf16 MXU operands (f32 accumulation); any indexing /
    # semantics bug would produce O(1) errors, far above this.
    np.testing.assert_allclose(np.asarray(out, np.float64), ref, rtol=2e-2, atol=2e-2)
    print("KERNEL_OK")
</pallas_src>

<mosaic_0001>
module attributes {stable_mosaic.version = 11 : i64} {
  func.func @_conv_stats_kernel(%arg0: i32, %arg1: i32, %arg2: memref<1x32x128xbf16, #tpu.memory_space<vmem>>, %arg3: memref<1x8x32xbf16, #tpu.memory_space<vmem>>, %arg4: memref<1x8x128xf32, #tpu.memory_space<vmem>>, %arg5: memref<1x1x8x2xf32, #tpu.memory_space<vmem>>) attributes {dimension_semantics = [#tpu.dimension_semantics<parallel>, #tpu.dimension_semantics<parallel>], iteration_bounds = array<i64: 8, 1>, scalar_prefetch = 0 : i64, scratch_operands = 0 : i64, tpu.core_type = #tpu.core_type<tc>, window_params = [{transform_indices = @transform_0, window_bounds = array<i64: 1, 32, 128>}, {transform_indices = @transform_1, window_bounds = array<i64: 1, 8, 32>}, {transform_indices = @transform_2, window_bounds = array<i64: 1, 8, 128>}, {transform_indices = @transform_3, window_bounds = array<i64: 1, 1, 8, 2>}]} {
    %c0 = arith.constant 0 : index
    %c0_0 = arith.constant 0 : index
    %c0_1 = arith.constant 0 : index
    %0 = vector.load %arg3[%c0, %c0_0, %c0_1] : memref<1x8x32xbf16, #tpu.memory_space<vmem>>, vector<1x8x32xbf16>
    %1 = vector.shape_cast %0 : vector<1x8x32xbf16> to vector<8x32xbf16>
    %c0_2 = arith.constant 0 : index
    %c0_3 = arith.constant 0 : index
    %c0_4 = arith.constant 0 : index
    %2 = vector.load %arg2[%c0_2, %c0_3, %c0_4] : memref<1x32x128xbf16, #tpu.memory_space<vmem>>, vector<1x32x128xbf16>
    %3 = vector.shape_cast %2 : vector<1x32x128xbf16> to vector<32x128xbf16>
    %cst = arith.constant dense<0.000000e+00> : vector<8x128xf32>
    %4 = tpu.matmul %1, %3, %cst {dimension_numbers = #tpu.dot_dimension_numbers<[1], [0], [0], [1], [0, 0, 1, 1], [], []>} : vector<8x32xbf16>, vector<32x128xbf16>, vector<8x128xf32> -> vector<8x128xf32>
    %c0_5 = arith.constant 0 : index
    %c0_6 = arith.constant 0 : index
    %c0_7 = arith.constant 0 : index
    %5 = vector.load %arg4[%c0_5, %c0_6, %c0_7] : memref<1x8x128xf32, #tpu.memory_space<vmem>>, vector<1x8x128xf32>
    %6 = vector.shape_cast %5 : vector<1x8x128xf32> to vector<8x128xf32>
    %7 = vector.shape_cast %4 : vector<8x128xf32> to vector<1x8x128xf32>
    tpu.vector_store %arg4[%c0_5, %c0_6, %c0_7], %7 {strides = array<i32>} : memref<1x8x128xf32, #tpu.memory_space<vmem>>, vector<1x8x128xf32>,
    %cst_8 = arith.constant dense<0.000000e+00> : vector<8xf32>
    %8 = vector.multi_reduction <add>, %4, %cst_8 [1] : vector<8x128xf32> to vector<8xf32>
    %9 = vector.shape_cast %8 : vector<8xf32> to vector<8x1xf32>
    %10 = arith.mulf %4, %4 : vector<8x128xf32>
    %cst_9 = arith.constant dense<0.000000e+00> : vector<8xf32>
    %11 = vector.multi_reduction <add>, %10, %cst_9 [1] : vector<8x128xf32> to vector<8xf32>
    %12 = vector.shape_cast %11 : vector<8xf32> to vector<8x1xf32>
    %13 = tpu.concatenate %9, %12 in 1 : vector<8x1xf32>, vector<8x1xf32> -> vector<8x2xf32>
    %c0_10 = arith.constant 0 : index
    %c0_11 = arith.constant 0 : index
    %c0_12 = arith.constant 0 : index
    %c0_13 = arith.constant 0 : index
    %14 = vector.load %arg5[%c0_10, %c0_11, %c0_12, %c0_13] : memref<1x1x8x2xf32, #tpu.memory_space<vmem>>, vector<1x1x8x2xf32>
    %15 = vector.shape_cast %14 : vector<1x1x8x2xf32> to vector<8x2xf32>
    %16 = vector.shape_cast %13 : vector<8x2xf32> to vector<1x1x8x2xf32>
    tpu.vector_store %arg5[%c0_10, %c0_11, %c0_12, %c0_13], %16 {strides = array<i32>} : memref<1x1x8x2xf32, #tpu.memory_space<vmem>>, vector<1x1x8x2xf32>,
    return
  }
  func.func @transform_0(%arg0: i32, %arg1: i32) -> (i32, i32, i32) {
    %c0_i32 = arith.constant 0 : i32
    %c0_i32_0 = arith.constant 0 : i32
    return %arg0, %c0_i32, %arg1 : i32, i32, i32
  }
  func.func @transform_1(%arg0: i32, %arg1: i32) -> (i32, i32, i32) {
    %c0_i32 = arith.constant 0 : i32
    %c0_i32_0 = arith.constant 0 : i32
    %c0_i32_1 = arith.constant 0 : i32
    return %arg0, %c0_i32, %c0_i32_0 : i32, i32, i32
  }
  func.func @transform_2(%arg0: i32, %arg1: i32) -> (i32, i32, i32) {
    %c0_i32 = arith.constant 0 : i32
    %c0_i32_0 = arith.constant 0 : i32
    return %arg0, %c0_i32, %arg1 : i32, i32, i32
  }
  func.func @transform_3(%arg0: i32, %arg1: i32) -> (i32, i32, i32, i32) {
    %c0_i32 = arith.constant 0 : i32
    %c0_i32_0 = arith.constant 0 : i32
    %c0_i32_1 = arith.constant 0 : i32
    return %arg0, %arg1, %c0_i32, %c0_i32_0 : i32, i32, i32, i32
  }
}

</mosaic_0001>

<bundles_post_ra>
// kernel: tpu_custom_call.1
= control target key start
LH: loop header
LB: loop body
LE: loop exit
PB: predicated region body
PF: predicated region fallthrough
CT: control target
= control target key end

     0   :  { %9 = vsyncpa [#allocation3], 0  ;;  %s988_s0 = inlined_call_operand.hbm [shape: bf16[8,32,128], index: 0, kind: input, shape index: {}]   ;;  %s989_s1 = inlined_call_operand.hbm [shape: bf16[8,8,32], index: 1, kind: input, shape index: {}]   ;;  %s990_s2 = inlined_call_operand.hbm [shape: f32[8,8,128], index: 2, kind: output, shape index: {0}]   ;;  %s991_s3 = inlined_call_operand.vmem [shape: f32[8,1,8,2], index: 3, kind: output, shape index: {1}]  }
   0x1   :  { %11 = vsyncpa [#allocation3 + $0x1], 0 }
   0x2   :  { %12 = vsyncpa [#allocation6], 0 }
   0x3   :  { %14 = vsyncpa [#allocation6 + $0x1], 0 }
   0x4   :  { %15 = vsyncpa [#allocation4], 0 }
   0x5   :  { %17 = vsyncpa [#allocation4 + $0x1], 0  ;;  %s775_s12 = smov 0   ;;  %s777_s13 = smov 0  }
   0x6   :  { %s779_s14 = smov 0   ;;  %s781_s15 = smov 0  }
   0x7   :  { %s783_s16 = smov 0   ;;  %s785_s17 = smov 0  }
   0x8 LB: > { %s494_s18 = sadd.s32 4294967295, %s746_s17   ;;  %s495_s19 = sadd.s32 4294967294, %s746_s17   ;;  %s746_s17 = sphi %s785_s17, %s23_s17   ;;  %s742_s16 = sphi %s783_s16, %s1009_s16   ;;  %s738_s15 = sphi %s781_s15, %s1008_s15   ;;  %s734_s14 = sphi %s779_s14, %s1007_s14   ;;  %s730_s13 = sphi %s777_s13, %s1006_s13   ;;  %s726_s12 = sphi %s775_s12, %s1005_s12  }
   0x9   : > { %s35_s20 = sadd.s32 1, %s742_s16  ;;  %s44_s21 = sadd.s32 1, %s734_s14 }
   0xa   : > { %p37_p0 = scmp.ge.s32.totalorder %s35_s20, 8  ;;  %p51_p1 = scmp.ne.s32.totalorder %s734_s14, %s730_s13 }
   0xb   : > { %p52_p2 = scmp.eq.s32.totalorder %s746_s17, 0  ;;  %p57_p3 = scmp.ne.s32.totalorder %s730_s13, %s726_s12 }
   0xc   : > { %s1011_s20 = smov (%p37_p0, %s35_s20), 0  ;;  %p58_p5 = scmp.eq.s32.totalorder %s494_s18, 0 }
   0xd   : > { %p816_p4 = por %p52_p2, %p51_p1  ;;  %s39_s23 = ssub.s32 %s742_s16, %s1011_s20 }
   0xe   : > { %p109_p6 = scmp.eq.s32.totalorder %s494_s18, 7  ;;  %p42_p7 = scmp.eq.s32.totalorder %s39_s23, 0 }
   0xf   : > { %p822_p8 = por %p58_p5, %p57_p3  ;;  %p115_p10 = scmp.eq.s32.totalorder %s495_s19, 7 }
  0x10   : > { %p826_p9 = por %p109_p6, %p51_p1  ;;  %p544_p12 = scmp.lt.s32.totalorder %s746_s17, 8 }
  0x11   : > { %s995_s24 = scalar_select %p822_p8, 1, 0 }
  0x12   : > { %s996_s25 = scalar_select %p826_p9, 1, 0 }
  0x13   : > { %s831_s26 = scalar_select %p42_p7, %s734_s14, %s44_s21  }
  0x14   : > { %p833_p11 = por %p115_p10, %p57_p3  ;;  %s839_s28 = sand.u32 1, %s734_s14  }
  0x15   : > { %s498_s29 = sshll.u32 %s839_s28, 4  ;;  %s515_s30 = sshll.u32 %s742_s16, 8 }
  0x16   : > { %s997_s27 = scalar_select %p833_p11, 1, 0 }
  0x17   : > { %s846_s6 = scalar_lea.hbm %s988_s0, %s515_s30  ;;  %s167_s7 = scalar_lea.vmem [#allocation2], %s498_s29 }
  0x18   : > { %s175_s8 = sshll.u32 %s167_s7, 4  ;;  %p852_p13 = pnand %p544_p12, %p816_p4  ;;  %s848_s8 = int_to_ptr.vmem [resolvable:$true] %s175_s8 }
  0x19   : > { %s164_s10 = scalar_lea.sflag [#allocation3], %s839_s28  ;;  %s600_s11 = scalar_lea.hbm %s846_s6, 256 }
  0x1a   : > { %p601_p1 = scmp.ne.s32.totalorder %s846_s6, %s600_s11  ;;  %p602_p2 = pneg %p852_p13 }
  0x1b   : > { %s605_s21 = scalar_lea.hbm %s988_s0, 2048  ;;  %p606_p4 = scmp.lt.u32.totalorder %s846_s6, %s988_s0 }
  0x1c   : > { %p603_p3 = pnand %p602_p2, %p601_p1  ;;  %p607_p6 = scmp.lt.u32.totalorder %s605_s21, %s600_s11 }
  0x1d   : > { %p609_p10 = scmp.lt.u32.totalorder %s600_s11, %s846_s6 }
  0x1e   : > { %p604_p5 = pneg %p603_p3  ;;  %p608_p7 = por %p607_p6, %p606_p4 }
  0x20   : > { %p610_p12 = por %p609_p10, %p608_p7 }
  0x22   : > { %p611_p0 = pnand %p610_p12, %p604_p5 }
  0x24   : > { %614 = shalt.err (!%p611_p0)
}
  0x25   : > { %s615_s29 = scalar_lea.vmem %s848_s8, 256  ;;  %s748_s30 = smov [#allocation2]  }
  0x26   : > { %p616_p1 = scmp.ne.s32.totalorder %s848_s8, %s615_s29  ;;  %s620_s4 = sshll.u32 %s748_s30, 4  ;;  %s621_s4 = int_to_ptr.vmem [resolvable:$false] %s620_s4 }
  0x27   : > { %s622_s5 = scalar_lea.vmem %s621_s4, 512  ;;  %p623_p9 = scmp.lt.s32.totalorder %s848_s8, %s621_s4 }
  0x28   : > { %p618_p3 = pnand %p616_p1, %p602_p2  ;;  %p624_p4 = scmp.lt.s32.totalorder %s622_s5, %s615_s29 }
  0x2a   : > { %p619_p11 = pneg %p618_p3  ;;  %p625_p6 = por %p624_p4, %p623_p9 }
  0x2c   : > { %p626_p7 = pnand %p625_p6, %p619_p11 }
  0x2e   : > { %629 = shalt.err (!%p626_p7)
}
  0x2f   : > { %s749_s7 = smov 64   ;;  %s750_s11 = smov 4  }
  0x30   : > { %536 = dma.hbm_to_vmem [thread:$0]  (!%p852_p13), %s846_s6, 256, %s848_s8, %s164_s10, %s749_s7, %s749_s7, %s750_s11  }
  0x31   : > { %p201_p0 = scmp.lt.s32.totalorder %s746_s17, 9  ;;  %s501_s18 = sshll.u32 %s839_s28, 2 }
  0x32   : > { %s502_s19 = sshll.u32 %s742_s16, 6  ;;  %p999_p9 = scmp.ge.s32.totalorder %s746_s17, 1 }
  0x33   : > { %s897_s29 = scalar_lea.hbm %s989_s1, %s502_s19  ;;  %s189_s30 = scalar_lea.vmem [#allocation5], %s501_s18 }
  0x34   : > { %p890_p11 = pnand %p999_p9, %p201_p0  ;;  %s196_s4 = sshll.u32 %s189_s30, 4  ;;  %s197_s4 = int_to_ptr.vmem [resolvable:$true] %s196_s4 }
  0x35   : > { %s186_s6 = scalar_lea.sflag [#allocation6], %s839_s28  ;;  %s630_s8 = scalar_lea.hbm %s897_s29, 64 }
  0x36   : > { %s1000_s21 = scalar_select %p890_p11, 1, 0 }
  0x37   : > { %p631_p5 = scmp.ne.s32.totalorder %s897_s29, %s630_s8  ;;  %s635_s7 = scalar_lea.hbm %s989_s1, 512 }
  0x38   : > { %p636_p1 = scmp.lt.u32.totalorder %s897_s29, %s989_s1  ;;  %p637_p3 = scmp.lt.u32.totalorder %s635_s7, %s630_s8 }
  0x39   : > { %p633_p10 = pnand %p631_p5, %p602_p2  ;;  %p639_p6 = scmp.lt.u32.totalorder %s630_s8, %s897_s29 }
  0x3a   : > { %p638_p4 = por %p637_p3, %p636_p1 }
  0x3b   : > { %p634_p12 = pneg %p633_p10 }
  0x3c   : > { %p640_p7 = por %p639_p6, %p638_p4 }
  0x3e   : > { %p641_p0 = pnand %p640_p7, %p634_p12 }
  0x40   : > { %644 = shalt.err (!%p641_p0)
}
  0x41   : > { %s645_s28 = scalar_lea.vmem %s197_s4, 64  ;;  %s751_s18 = smov [#allocation5]  }
  0x42   : > { %p646_p9 = scmp.ne.s32.totalorder %s197_s4, %s645_s28  ;;  %s650_s22 = sshll.u32 %s751_s18, 4  ;;  %s651_s22 = int_to_ptr.vmem [resolvable:$false] %s650_s22 }
  0x43   : > { %s652_s23 = scalar_lea.vmem %s651_s22, 128  ;;  %p653_p8 = scmp.lt.s32.totalorder %s197_s4, %s651_s22 }
  0x44   : > { %p648_p5 = pnand %p646_p9, %p602_p2  ;;  %p654_p11 = scmp.lt.s32.totalorder %s652_s23, %s645_s28 }
  0x46   : > { %p649_p10 = pneg %p648_p5  ;;  %p655_p1 = por %p654_p11, %p653_p8 }
  0x48   : > { %p656_p3 = pnand %p655_p1, %p649_p10 }
  0x4a   : > { %659 = shalt.err (!%p656_p3)
}
  0x4b   : > { %539 = dma.hbm_to_vmem [thread:$0]  (!%p852_p13), %s897_s29, 64, %s197_s4, %s186_s6  }
  0x4c   : > { %p1001_p12 = scmp.ne.s32.totalorder %s1000_s21, 0 }
  0x4d   : > { %s922_s30 = sand.u32 (!%p1001_p12), 1, %s730_s13   ;;  %p1002_p2 = scmp.ne.s32.totalorder (!%p1001_p12), %s995_s24, 0 }
  0x4e   : > { %205 = sbr.rel (%p1001_p12) target bundleno = 458 (0x1ca), region = 28  ;;  %s504_s8 = sshll.u32 (!%p1001_p12), %s922_s30, 4 }
  0x4f   : > { %s208_s10 = scalar_lea.sflag (!%p1001_p12), [#allocation3], %s922_s30  ;;  %s211_s5 = scalar_lea.vmem (!%p1001_p12), [#allocation2], %s504_s8 }
  0x55   : > { %713 = dma.done.wait (%p1002_p2), %s208_s10, 256  }
  0x56   : > { %715 = vsyncadd (%p1002_p2), %s208_s10, 4294967040  ;;  %s505_s9 = sshll.u32 %s922_s30, 2  ;;  %s217_s21 = scalar_lea.sflag [#allocation6], %s922_s30 }
  0x57   : > { %s220_s29 = scalar_lea.vmem [#allocation5], %s505_s9 }
  0x58   : > { %717 = dma.done.wait (%p1002_p2), %s217_s21, 64  }
  0x59   : > { %719 = vsyncadd (%p1002_p2), %s217_s21, 4294967232  ;;  %v752_v0 = vmov 0.0   ;;  %vm753_vm0 = vmmov 0   ;;  %v598_v1 = vld [vmem:[%s211_s5] sm:$0xff]   ;;  %v599_v2 = vld [vmem:[%s211_s5 + $0x8] sm:$0xff]   ;;  %vm280_vm1 = vcmask 261120  }
  0x5a   : > { %519 = vmatprep.subr.bf16.mxu0 %v752_v0  ;;  %523 = vmatprep.mubr.msk.bf16.mxu0 %vm753_vm0, %v752_v0  ;;  %v263_v3 = vld [vmem:[%s220_s29] sm:$0xf]  ;;  %s506_s4 = sshll.u32 %s922_s30, 3  ;;  %s512_s6 = sshll.u32 %s738_s15, 7 }
  0x5b   : > { %520 = vmatpush3.bf16.msra.mxu0 %v598_v1  ;;  %s245_s24 = scalar_lea.vmem [#allocation7], %s506_s4  ;;  %s941_s19 = scalar_lea.hbm %s990_s2, %s512_s6 }
  0x5c   : > { %521 = vmatprep.subr.bf16.mxu0 %v752_v0  ;;  %s356_s28 = sshll.u32 %s245_s24, 4  ;;  %s335_s18 = scalar_lea.sflag [#allocation4], %s922_s30  ;;  %s357_s28 = int_to_ptr.vmem [resolvable:$true] %s356_s28 }
  0x5d   : > { %s660_s22 = scalar_lea.vmem %s357_s28, 128  ;;  %p1003_p13 = scmp.ne.s32.totalorder %s996_s25, 0 }
  0x5e   : > { %p661_p8 = scmp.ne.s32.totalorder %s357_s28, %s660_s22  ;;  %s754_s23 = smov [#allocation7]  }
  0x5f   : > { %522 = vmatpush3.bf16.msra.mxu0 %v599_v2  ;;  %s664_s8 = sshll.u32 %s754_s23, 4  ;;  %s665_s8 = int_to_ptr.vmem [resolvable:$false] %s664_s8 }
  0x60   : > { %p662_p11 = pnand %p661_p8, %p1003_p13  ;;  %s666_s10 = scalar_lea.vmem %s665_s8, 256 }
  0x61   : > { %p667_p6 = scmp.lt.s32.totalorder %s357_s28, %s665_s8  ;;  %p668_p7 = scmp.lt.s32.totalorder %s666_s10, %s660_s22 }
  0x62   : > { %524 = vmatmul.mubr.msk.bf16.vlgmr.msra.gmra.mrb[0].mxu0 %vm280_vm1, %v263_v3  ;;  %p663_p4 = pneg %p662_p11 }
  0x63   : > { %p669_p0 = por %p668_p7, %p667_p6 }
  0x65   : > { %p670_p9 = pnand %p669_p0, %p663_p4 }
 0x135   : > { %v318_v4 = vpop.f32.mrb[0].mxu0 }
 0x136   : > { %324 = vst [vmem:[%s245_s24] sm:$0xff] %v318_v4  ;;  %325 = vadd.xlane.f32.xlu0 %v318_v4  ;;  %v525_v5 = vpop.f32.mrb[1].mxu0  ;;  %v327_v8 = vmul.f32 %v318_v4, %v318_v4 }
 0x137   : > { %v321_v6 = vpop.f32.mrb[2].mxu0 }
 0x138   : > { %v526_v7 = vpop.f32.mrb[3].mxu0 }
 0x13a   : > { %328 = vadd.xlane.f32.xlu0 %v327_v8 }
 0x13b   : > { %673 = shalt.err (!%p670_p9)
}
 0x13c   : > { %s674_s30 = scalar_lea.hbm %s941_s19, 128  ;;  %s678_s21 = scalar_lea.hbm %s990_s2, 1024 }
 0x13d   : > { %p675_p5 = scmp.ne.s32.totalorder %s941_s19, %s674_s30  ;;  %p679_p3 = scmp.lt.u32.totalorder %s941_s19, %s990_s2 }
 0x13e   : > { %p680_p12 = scmp.lt.u32.totalorder %s678_s21, %s674_s30  ;;  %p682_p8 = scmp.lt.u32.totalorder %s674_s30, %s941_s19 }
 0x13f   : > { %p676_p10 = pnand %p675_p5, %p1003_p13 }
 0x140   : > { %p681_p2 = por %p680_p12, %p679_p3 }
 0x141   : > { %p677_p1 = pneg %p676_p10 }
 0x142   : > { %p683_p11 = por %p682_p8, %p681_p2 }
 0x144   : > { %p684_p4 = pnand %p683_p11, %p677_p1 }
 0x146   : > { %687 = shalt.err (!%p684_p4)
}
 0x147   : > { %531 = dma.vmem_to_hbm [thread:$0]  (%p1003_p13), %s357_s28, 128, %s941_s19, %s335_s18   ;;  %vm330_vm2 = vcmask 7168   ;;  %vm332_vm3 = vcmask 15360  }
 0x148   : > { %p255_p6 = scmp.lt.s32.totalorder %s738_s15, 7 }
 0x14a   : > { %s1013_s15 = smov (!%p255_p6, %s738_s15), 7 }
 0x14b   : > { %s507_s24 = sshll.u32 %s1013_s15, 3 }
 0x14c   : > { %s261_s11 = scalar_lea.vmem %s991_s3, %s507_s24 }
 0x1c3   : > { %v326_v9 = vpop.xlane.xlu0 %325 }
 0x1c7   : > { %v329_v10 = vpop.xlane.xlu0 %328 }
 0x1c8   : > { %v331_v11 = vsel %vm330_vm2, %v326_v9, %v329_v10 }
 0x1c9   : > { %333 = vst.msk [vmem:[%s261_s11] sm:$0xff] %vm332_vm3, %v331_v11 }
 0x1ca PF: > { %p545_p7 = scmp.ge.s32.totalorder %s746_s17, 2  ;;  %s371_s25 = sand.u32 1, %s726_s12  }
 0x1cb   : > { %p1004_p13 = scmp.ne.s32.totalorder %s997_s27, 0  ;;  %s372_s19 = scalar_lea.sflag [#allocation4], %s371_s25 }
 0x1cd   : > { %p541_p0 = pnand %p545_p7, %p1004_p13 }
 0x1cf   : > { %721 = dma.done.wait (!%p541_p0), %s372_s19, 128  }
 0x1d0   : > { %723 = vsyncadd (!%p541_p0), %s372_s19, 4294967168  ;;  %s23_s17 = sadd.s32 1, %s746_s17   ;;  %s1005_s12 = smov %s730_s13 }
 0x1d1   : > { %p20_p9 = scmp.ge.s32.totalorder %s23_s17, 10   ;;  %s1006_s13 = smov %s734_s14 }
 0x1d2   : > { %s1007_s14 = smov %s831_s26  ;;  %s1008_s15 = smov %s742_s16 }
 0x1d3   : > { %s1009_s16 = smov %s1011_s20  ;;  %22 = sbr.rel (!%p20_p9) target bundleno = 8 (0x8), region = 98 }
 0x1da   :  { %387 = vsyncpa [#allocation3], 1 }
 0x1db   :  { %389 = vsyncpa [#allocation3 + $0x1], 1 }
 0x1dc   :  { %390 = vsyncpa [#allocation6], 1 }
 0x1dd   :  { %392 = vsyncpa [#allocation6 + $0x1], 1 }
 0x1de   :  { %393 = vsyncpa [#allocation4], 1 }
 0x1df   :  { %395 = vsyncpa [#allocation4 + $0x1], 1 }

</bundles_post_ra>
